<compile_context>
chip_gen: v6e
topology: v6e:2x2x1
jax: 0.10.0
libtpu: 0.0.40
codegen_flags: <defaults>
</compile_context>

<pallas_src>
import jax
import jax.numpy as jnp
from jax import lax
from jax.experimental import pallas as pl
from jax.experimental.pallas import tpu as pltpu

EPS = 1e-5  # nn.BatchNorm2d default

# VMEM sizing: budget for the double-buffered x/out tiles, and the scoped VMEM
# limit requested from the compiler. 16 MiB / 32 MiB are safe on every
# generation (v5e 128 MiB phys / 16 MiB default scoped, v6e 128/32, v7x 64/32).
_TILE_BUDGET_BYTES = 16 * 1024 * 1024
_VMEM_LIMIT_BYTES = 32 * 1024 * 1024
_MAX_BN = 8  # cap samples-per-step (bounds in-kernel unroll & intermediates)


def _pick_blocks(n, hwp, c_in, c_out, x_bytes, out_bytes, w_bytes):
    """VMEM-aware (bn, tm): largest lane-dense spatial tile + batched samples.

    Double-buffered bytes per spatial column = 2*(C_in*x_bytes + C_out*out_bytes);
    grow tm (multiple-of-128 divisor of padded HW), then bn (divisor of N), while
    the working set stays under budget. Keeps tiles big enough to amortize the
    ~0.35us per-grid-step overhead without spilling on any TPU generation.
    """
    budget = max(_TILE_BUDGET_BYTES - 2 * w_bytes, 2 * 1024 * 1024)
    per_col = 2 * (c_in * x_bytes + c_out * out_bytes)
    tm = 128
    for t in range(128, hwp + 1, 128):
        if hwp % t == 0 and t * per_col <= budget:
            tm = t
    bn = 1
    for d in range(1, min(n, _MAX_BN) + 1):
        if n % d == 0 and d * tm * per_col <= budget:
            bn = d
    return bn, tm


def _stats_kernel(x_ref, w_ref, sum_ref, sq_ref):
    # x_ref: (bn, C_in, tm)   native dtype
    # w_ref: (C_out, C_in)    same dtype as x (bf16 MXU path for bf16 inputs)
    # sum_ref / sq_ref: (C_out, 1) f32 partial accumulators for this batch
    #   block; revisited across the (arbitrary) spatial-tile axis, so they act
    #   as resident VMEM accumulators and are written back once per batch block.
    m = pl.program_id(1)

    @pl.when(m == 0)
    def _():
        sum_ref[...] = jnp.zeros_like(sum_ref)
        sq_ref[...] = jnp.zeros_like(sq_ref)

    w = w_ref[...]
    for b in range(x_ref.shape[0]):  # static unroll over samples in the block
        y = jnp.dot(w, x_ref[b], preferred_element_type=jnp.float32)
        sum_ref[...] += jnp.sum(y, axis=1, keepdims=True)
        sq_ref[...] += jnp.sum(y * y, axis=1, keepdims=True)
    # NOTE: a Gram-matrix formulation (accumulate x@x.T, finalize with W) would
    # cut per-tile VPU/XLU work when C_in <= C_out; pass 1 is HBM-bound at these
    # channel counts so the simple y-based accumulation is kept.


def _apply_kernel(x_ref, w_ref, shift_ref, o_ref):
    # w_ref is pre-scaled by (gamma * inv_std); BN epilogue is one add/element.
    w = w_ref[...]
    shift = shift_ref[...]  # (C_out, 1) f32
    for b in range(x_ref.shape[0]):
        y = jnp.dot(w, x_ref[b], preferred_element_type=jnp.float32) + shift
        o_ref[b] = y.astype(o_ref.dtype)


@jax.jit
def conv_bn_forward(x_nchw, weight, gamma, beta):
    """x_nchw: (N, C_in, H, W); weight: (C_out, C_in[,1,1]); gamma/beta: (C_out,)."""
    N, C_in, H, W = x_nchw.shape
    C_out = weight.shape[0]
    HW = H * W
    M = N * HW

    # Free reshape; keep the native dtype (no wrapper-side upcast / HBM pass).
    x3d = x_nchw.reshape(N, C_in, HW)
    # Pad spatial dim to a multiple of 128 -> lane-dense blocks / unmasked vst.
    # Zero columns are stats-safe: W @ 0 == 0, and we divide by the true M.
    HWp = -(-HW // 128) * 128
    if HWp != HW:
        x3d = jnp.pad(x3d, ((0, 0), (0, 0), (0, HWp - HW)))

    w2d = weight.reshape(C_out, C_in).astype(jnp.float32)
    g2d = gamma.reshape(C_out, 1).astype(jnp.float32)
    b2d = beta.reshape(C_out, 1).astype(jnp.float32)

    x_bytes = x3d.dtype.itemsize
    bn, tm = _pick_blocks(N, HWp, C_in, C_out, x_bytes, x_bytes, C_out * C_in * 4)
    GN, GM = N // bn, HWp // tm

    # Run the MXU in the input dtype (bf16 inputs -> bf16 matmul, f32 accum).
    w_p1 = w2d if x3d.dtype == jnp.float32 else w2d.astype(x3d.dtype)

    x_spec = pl.BlockSpec((bn, C_in, tm), lambda g, m: (g, 0, m))
    w_spec = pl.BlockSpec((C_out, C_in), lambda g, m: (0, 0))
    stat_spec = pl.BlockSpec((None, C_out, 1), lambda g, m: (g, 0, 0))

    # ---- Pass 1: per-batch-block partial BN statistics (megacore-parallel) ----
    psum, psq = pl.pallas_call(
        _stats_kernel,
        out_shape=(jax.ShapeDtypeStruct((GN, C_out, 1), jnp.float32),
                   jax.ShapeDtypeStruct((GN, C_out, 1), jnp.float32)),
        grid_spec=pltpu.PrefetchScalarGridSpec(
            num_scalar_prefetch=0,
            grid=(GN, GM),
            in_specs=[x_spec, w_spec],
            out_specs=[stat_spec, stat_spec]),
        compiler_params=pltpu.CompilerParams(
            dimension_semantics=("parallel", "arbitrary"),
            vmem_limit_bytes=_VMEM_LIMIT_BYTES),
    )(x3d, w_p1)

    # Finalize stats + fold BN scale into W: tiny (C_out, C_in) fused XLA ops.
    sum_y = jnp.sum(psum, axis=0)
    sq_y = jnp.sum(psq, axis=0)
    mean = sum_y / M
    # E[y^2]-E[y]^2 with f32 accumulators; clamp guards tiny negative rounding.
    var = jnp.maximum(sq_y / M - mean * mean, 0.0)  # biased variance (PyTorch BN)
    scale = g2d * lax.rsqrt(var + EPS)
    shift = b2d - mean * scale
    w_scaled = w2d * scale
    w_p2 = w_scaled if x3d.dtype == jnp.float32 else w_scaled.astype(x3d.dtype)

    shift_spec = pl.BlockSpec((C_out, 1), lambda g, m: (0, 0))
    out_spec = pl.BlockSpec((bn, C_out, tm), lambda g, m: (g, 0, m))

    # ---- Pass 2: fused (scaled) conv + shift, fully parallel / pipelined ----
    out3d = pl.pallas_call(
        _apply_kernel,
        out_shape=jax.ShapeDtypeStruct((N, C_out, HWp), x3d.dtype),
        grid_spec=pltpu.PrefetchScalarGridSpec(
            num_scalar_prefetch=0,
            grid=(GN, GM),
            in_specs=[x_spec, w_spec, shift_spec],
            out_specs=out_spec),
        compiler_params=pltpu.CompilerParams(
            dimension_semantics=("parallel", "parallel"),
            vmem_limit_bytes=_VMEM_LIMIT_BYTES),
    )(x3d, w_p2, shift)

    # Drop spatial padding (no-op slice when HW was already a multiple of 128)
    # and reshape back to NCHW for free.
    return out3d[:, :, :HW].reshape(N, C_out, H, W)
    # TODO(synk): PyTorch training-mode BatchNorm2d also updates running_mean /
    # running_var buffers; those side-effect updates are not emitted here.


if __name__ == "__main__":
    key = jax.random.PRNGKey(0)
    kx, kw, kg, kb = jax.random.split(key, 4)

    N, C_in, C_out, H, W = 2, 4, 8, 16, 16

    x = jax.random.normal(kx, (N, C_in, H, W), dtype=jnp.float32)

    # Deterministic synthetic params (conv weight ~ kaiming-ish scale);
    # non-trivial gamma/beta to exercise the full affine path.
    fan_in = C_in * 1 * 1
    weight = jax.random.normal(kw, (C_out, C_in), dtype=jnp.float32) / jnp.sqrt(fan_in)
    gamma = 1.0 + 0.1 * jax.random.normal(kg, (C_out,), dtype=jnp.float32)
    beta = 0.1 * jax.random.normal(kb, (C_out,), dtype=jnp.float32)

    out = conv_bn_forward(x, weight, gamma, beta)
    jax.block_until_ready(out)

    # Pure-JAX reference (PyTorch training-mode BN: biased variance, eps=1e-5).
    y_ref = jnp.einsum("oc,nchw->nohw", weight, x)
    m_ref = y_ref.mean(axis=(0, 2, 3), keepdims=True)
    v_ref = ((y_ref - m_ref) ** 2).mean(axis=(0, 2, 3), keepdims=True)
    ref = (y_ref - m_ref) / jnp.sqrt(v_ref + EPS) * gamma.reshape(1, -1, 1, 1) \
          + beta.reshape(1, -1, 1, 1)

    assert out.shape == (N, C_out, H, W)
    err = float(jnp.max(jnp.abs(out - ref)))
    assert err < 1e-4, f"max abs err {err}"
    print("KERNEL_OK")
</pallas_src>

<mosaic_0001>
module attributes {stable_mosaic.version = 11 : i64} {
  func.func @_stats_kernel(%arg0: i32, %arg1: i32, %arg2: memref<2x4x256xf32, #tpu.memory_space<vmem>>, %arg3: memref<8x4xf32, #tpu.memory_space<vmem>>, %arg4: memref<1x8x1xf32, #tpu.memory_space<vmem>>, %arg5: memref<1x8x1xf32, #tpu.memory_space<vmem>>) attributes {dimension_semantics = [#tpu.dimension_semantics<parallel>, #tpu.dimension_semantics<arbitrary>], iteration_bounds = array<i64: 1, 1>, scalar_prefetch = 0 : i64, scratch_operands = 0 : i64, tpu.core_type = #tpu.core_type<tc>, window_params = [{transform_indices = @transform_0, window_bounds = array<i64: 2, 4, 256>}, {pipeline_mode = #tpu.pipeline_mode<synchronous>, transform_indices = @transform_1, window_bounds = array<i64: 8, 4>}, {transform_indices = @transform_2, window_bounds = array<i64: 1, 8, 1>}, {transform_indices = @transform_3, window_bounds = array<i64: 1, 8, 1>}]} {
    %c0_i32 = arith.constant 0 : i32
    %0 = arith.cmpi eq, %arg1, %c0_i32 : i32
    %1 = arith.extui %0 : i1 to i32
    %c0_i32_0 = arith.constant 0 : i32
    %2 = arith.cmpi ne, %1, %c0_i32_0 : i32
    scf.if %2 {
      %cst_36 = arith.constant 0.000000e+00 : f32
      %44 = vector.broadcast %cst_36 : f32 to vector<8x1xf32>
      %c0_37 = arith.constant 0 : index
      %c0_38 = arith.constant 0 : index
      %c0_39 = arith.constant 0 : index
      %45 = vector.load %arg4[%c0_37, %c0_38, %c0_39] : memref<1x8x1xf32, #tpu.memory_space<vmem>>, vector<1x8x1xf32>
      %46 = vector.shape_cast %45 : vector<1x8x1xf32> to vector<8x1xf32>
      %47 = vector.shape_cast %44 : vector<8x1xf32> to vector<1x8x1xf32>
      tpu.vector_store %arg4[%c0_37, %c0_38, %c0_39], %47 {strides = array<i32>} : memref<1x8x1xf32, #tpu.memory_space<vmem>>, vector<1x8x1xf32>,
      %cst_40 = arith.constant 0.000000e+00 : f32
      %48 = vector.broadcast %cst_40 : f32 to vector<8x1xf32>
      %c0_41 = arith.constant 0 : index
      %c0_42 = arith.constant 0 : index
      %c0_43 = arith.constant 0 : index
      %49 = vector.load %arg5[%c0_41, %c0_42, %c0_43] : memref<1x8x1xf32, #tpu.memory_space<vmem>>, vector<1x8x1xf32>
      %50 = vector.shape_cast %49 : vector<1x8x1xf32> to vector<8x1xf32>
      %51 = vector.shape_cast %48 : vector<8x1xf32> to vector<1x8x1xf32>
      tpu.vector_store %arg5[%c0_41, %c0_42, %c0_43], %51 {strides = array<i32>} : memref<1x8x1xf32, #tpu.memory_space<vmem>>, vector<1x8x1xf32>,
    } else {
    }
    %c0 = arith.constant 0 : index
    %c0_1 = arith.constant 0 : index
    %3 = vector.load %arg3[%c0, %c0_1] : memref<8x4xf32, #tpu.memory_space<vmem>>, vector<8x4xf32>
    %c0_2 = arith.constant 0 : index
    %c0_3 = arith.constant 0 : index
    %c0_4 = arith.constant 0 : index
    %4 = vector.load %arg2[%c0_2, %c0_3, %c0_4] : memref<2x4x256xf32, #tpu.memory_space<vmem>>, vector<1x4x256xf32>
    %5 = vector.shape_cast %4 : vector<1x4x256xf32> to vector<4x256xf32>
    %cst = arith.constant dense<0.000000e+00> : vector<8x256xf32>
    %6 = tpu.matmul %3, %5, %cst {dimension_numbers = #tpu.dot_dimension_numbers<[1], [0], [0], [1], [0, 0, 1, 1], [], []>} : vector<8x4xf32>, vector<4x256xf32>, vector<8x256xf32> -> vector<8x256xf32>
    %c0_5 = arith.constant 0 : index
    %c0_6 = arith.constant 0 : index
    %c0_7 = arith.constant 0 : index
    %7 = vector.load %arg4[%c0_5, %c0_6, %c0_7] : memref<1x8x1xf32, #tpu.memory_space<vmem>>, vector<1x8x1xf32>
    %8 = vector.shape_cast %7 : vector<1x8x1xf32> to vector<8x1xf32>
    %cst_8 = arith.constant dense<0.000000e+00> : vector<8xf32>
    %9 = vector.multi_reduction <add>, %6, %cst_8 [1] : vector<8x256xf32> to vector<8xf32>
    %10 = vector.shape_cast %9 : vector<8xf32> to vector<8x1xf32>
    %11 = arith.addf %8, %10 : vector<8x1xf32>
    %c0_9 = arith.constant 0 : index
    %c0_10 = arith.constant 0 : index
    %c0_11 = arith.constant 0 : index
    %12 = vector.load %arg4[%c0_9, %c0_10, %c0_11] : memref<1x8x1xf32, #tpu.memory_space<vmem>>, vector<1x8x1xf32>
    %13 = vector.shape_cast %12 : vector<1x8x1xf32> to vector<8x1xf32>
    %14 = vector.shape_cast %11 : vector<8x1xf32> to vector<1x8x1xf32>
    tpu.vector_store %arg4[%c0_9, %c0_10, %c0_11], %14 {strides = array<i32>} : memref<1x8x1xf32, #tpu.memory_space<vmem>>, vector<1x8x1xf32>,
    %c0_12 = arith.constant 0 : index
    %c0_13 = arith.constant 0 : index
    %c0_14 = arith.constant 0 : index
    %15 = vector.load %arg5[%c0_12, %c0_13, %c0_14] : memref<1x8x1xf32, #tpu.memory_space<vmem>>, vector<1x8x1xf32>
    %16 = vector.shape_cast %15 : vector<1x8x1xf32> to vector<8x1xf32>
    %17 = arith.mulf %6, %6 : vector<8x256xf32>
    %cst_15 = arith.constant dense<0.000000e+00> : vector<8xf32>
    %18 = vector.multi_reduction <add>, %17, %cst_15 [1] : vector<8x256xf32> to vector<8xf32>
    %19 = vector.shape_cast %18 : vector<8xf32> to vector<8x1xf32>
    %20 = arith.addf %16, %19 : vector<8x1xf32>
    %c0_16 = arith.constant 0 : index
    %c0_17 = arith.constant 0 : index
    %c0_18 = arith.constant 0 : index
    %21 = vector.load %arg5[%c0_16, %c0_17, %c0_18] : memref<1x8x1xf32, #tpu.memory_space<vmem>>, vector<1x8x1xf32>
    %22 = vector.shape_cast %21 : vector<1x8x1xf32> to vector<8x1xf32>
    %23 = vector.shape_cast %20 : vector<8x1xf32> to vector<1x8x1xf32>
    tpu.vector_store %arg5[%c0_16, %c0_17, %c0_18], %23 {strides = array<i32>} : memref<1x8x1xf32, #tpu.memory_space<vmem>>, vector<1x8x1xf32>,
    %c1 = arith.constant 1 : index
    %c0_19 = arith.constant 0 : index
    %c0_20 = arith.constant 0 : index
    %24 = vector.load %arg2[%c1, %c0_19, %c0_20] : memref<2x4x256xf32, #tpu.memory_space<vmem>>, vector<1x4x256xf32>
    %25 = vector.shape_cast %24 : vector<1x4x256xf32> to vector<4x256xf32>
    %cst_21 = arith.constant dense<0.000000e+00> : vector<8x256xf32>
    %26 = tpu.matmul %3, %25, %cst_21 {dimension_numbers = #tpu.dot_dimension_numbers<[1], [0], [0], [1], [0, 0, 1, 1], [], []>} : vector<8x4xf32>, vector<4x256xf32>, vector<8x256xf32> -> vector<8x256xf32>
    %c0_22 = arith.constant 0 : index
    %c0_23 = arith.constant 0 : index
    %c0_24 = arith.constant 0 : index
    %27 = vector.load %arg4[%c0_22, %c0_23, %c0_24] : memref<1x8x1xf32, #tpu.memory_space<vmem>>, vector<1x8x1xf32>
    %28 = vector.shape_cast %27 : vector<1x8x1xf32> to vector<8x1xf32>
    %cst_25 = arith.constant dense<0.000000e+00> : vector<8xf32>
    %29 = vector.multi_reduction <add>, %26, %cst_25 [1] : vector<8x256xf32> to vector<8xf32>
    %30 = vector.shape_cast %29 : vector<8xf32> to vector<8x1xf32>
    %31 = arith.addf %28, %30 : vector<8x1xf32>
    %c0_26 = arith.constant 0 : index
    %c0_27 = arith.constant 0 : index
    %c0_28 = arith.constant 0 : index
    %32 = vector.load %arg4[%c0_26, %c0_27, %c0_28] : memref<1x8x1xf32, #tpu.memory_space<vmem>>, vector<1x8x1xf32>
    %33 = vector.shape_cast %32 : vector<1x8x1xf32> to vector<8x1xf32>
    %34 = vector.shape_cast %31 : vector<8x1xf32> to vector<1x8x1xf32>
    tpu.vector_store %arg4[%c0_26, %c0_27, %c0_28], %34 {strides = array<i32>} : memref<1x8x1xf32, #tpu.memory_space<vmem>>, vector<1x8x1xf32>,
    %c0_29 = arith.constant 0 : index
    %c0_30 = arith.constant 0 : index
    %c0_31 = arith.constant 0 : index
    %35 = vector.load %arg5[%c0_29, %c0_30, %c0_31] : memref<1x8x1xf32, #tpu.memory_space<vmem>>, vector<1x8x1xf32>
    %36 = vector.shape_cast %35 : vector<1x8x1xf32> to vector<8x1xf32>
    %37 = arith.mulf %26, %26 : vector<8x256xf32>
    %cst_32 = arith.constant dense<0.000000e+00> : vector<8xf32>
    %38 = vector.multi_reduction <add>, %37, %cst_32 [1] : vector<8x256xf32> to vector<8xf32>
    %39 = vector.shape_cast %38 : vector<8xf32> to vector<8x1xf32>
    %40 = arith.addf %36, %39 : vector<8x1xf32>
    %c0_33 = arith.constant 0 : index
    %c0_34 = arith.constant 0 : index
    %c0_35 = arith.constant 0 : index
    %41 = vector.load %arg5[%c0_33, %c0_34, %c0_35] : memref<1x8x1xf32, #tpu.memory_space<vmem>>, vector<1x8x1xf32>
    %42 = vector.shape_cast %41 : vector<1x8x1xf32> to vector<8x1xf32>
    %43 = vector.shape_cast %40 : vector<8x1xf32> to vector<1x8x1xf32>
    tpu.vector_store %arg5[%c0_33, %c0_34, %c0_35], %43 {strides = array<i32>} : memref<1x8x1xf32, #tpu.memory_space<vmem>>, vector<1x8x1xf32>,
    return
  }
  func.func @transform_0(%arg0: i32, %arg1: i32) -> (i32, i32, i32) {
    %c0_i32 = arith.constant 0 : i32
    %c0_i32_0 = arith.constant 0 : i32
    return %arg0, %c0_i32, %arg1 : i32, i32, i32
  }
  func.func @transform_1(%arg0: i32, %arg1: i32) -> (i32, i32) {
    %c0_i32 = arith.constant 0 : i32
    %c0_i32_0 = arith.constant 0 : i32
    %c0_i32_1 = arith.constant 0 : i32
    return %c0_i32, %c0_i32_0 : i32, i32
  }
  func.func @transform_2(%arg0: i32, %arg1: i32) -> (i32, i32, i32) {
    %c0_i32 = arith.constant 0 : i32
    %c0_i32_0 = arith.constant 0 : i32
    %c0_i32_1 = arith.constant 0 : i32
    return %arg0, %c0_i32, %c0_i32_0 : i32, i32, i32
  }
  func.func @transform_3(%arg0: i32, %arg1: i32) -> (i32, i32, i32) {
    %c0_i32 = arith.constant 0 : i32
    %c0_i32_0 = arith.constant 0 : i32
    %c0_i32_1 = arith.constant 0 : i32
    return %arg0, %c0_i32, %c0_i32_0 : i32, i32, i32
  }
}

module attributes {stable_mosaic.version = 11 : i64} {
  func.func @_apply_kernel(%arg0: i32, %arg1: i32, %arg2: memref<2x4x256xf32, #tpu.memory_space<vmem>>, %arg3: memref<8x4xf32, #tpu.memory_space<vmem>>, %arg4: memref<8x1xf32, #tpu.memory_space<vmem>>, %arg5: memref<2x8x256xf32, #tpu.memory_space<vmem>>) attributes {dimension_semantics = [#tpu.dimension_semantics<parallel>, #tpu.dimension_semantics<parallel>], iteration_bounds = array<i64: 1, 1>, scalar_prefetch = 0 : i64, scratch_operands = 0 : i64, tpu.core_type = #tpu.core_type<tc>, window_params = [{transform_indices = @transform_0, window_bounds = array<i64: 2, 4, 256>}, {pipeline_mode = #tpu.pipeline_mode<synchronous>, transform_indices = @transform_1, window_bounds = array<i64: 8, 4>}, {pipeline_mode = #tpu.pipeline_mode<synchronous>, transform_indices = @transform_2, window_bounds = array<i64: 8, 1>}, {transform_indices = @transform_3, window_bounds = array<i64: 2, 8, 256>}]} {
    %c0 = arith.constant 0 : index
    %c0_0 = arith.constant 0 : index
    %0 = vector.load %arg3[%c0, %c0_0] : memref<8x4xf32, #tpu.memory_space<vmem>>, vector<8x4xf32>
    %c0_1 = arith.constant 0 : index
    %c0_2 = arith.constant 0 : index
    %1 = vector.load %arg4[%c0_1, %c0_2] : memref<8x1xf32, #tpu.memory_space<vmem>>, vector<8x1xf32>
    %c0_3 = arith.constant 0 : index
    %c0_4 = arith.constant 0 : index
    %c0_5 = arith.constant 0 : index
    %2 = vector.load %arg2[%c0_3, %c0_4, %c0_5] : memref<2x4x256xf32, #tpu.memory_space<vmem>>, vector<1x4x256xf32>
    %3 = vector.shape_cast %2 : vector<1x4x256xf32> to vector<4x256xf32>
    %cst = arith.constant dense<0.000000e+00> : vector<8x256xf32>
    %4 = tpu.matmul %0, %3, %cst {dimension_numbers = #tpu.dot_dimension_numbers<[1], [0], [0], [1], [0, 0, 1, 1], [], []>} : vector<8x4xf32>, vector<4x256xf32>, vector<8x256xf32> -> vector<8x256xf32>
    %5 = vector.broadcast %1 : vector<8x1xf32> to vector<8x256xf32>
    %6 = arith.addf %4, %5 : vector<8x256xf32>
    %c0_6 = arith.constant 0 : index
    %c0_7 = arith.constant 0 : index
    %c0_8 = arith.constant 0 : index
    %7 = vector.load %arg5[%c0_6, %c0_7, %c0_8] : memref<2x8x256xf32, #tpu.memory_space<vmem>>, vector<1x8x256xf32>
    %8 = vector.shape_cast %7 : vector<1x8x256xf32> to vector<8x256xf32>
    %9 = vector.shape_cast %6 : vector<8x256xf32> to vector<1x8x256xf32>
    tpu.vector_store %arg5[%c0_6, %c0_7, %c0_8], %9 {strides = array<i32>} : memref<2x8x256xf32, #tpu.memory_space<vmem>>, vector<1x8x256xf32>,
    %c1 = arith.constant 1 : index
    %c0_9 = arith.constant 0 : index
    %c0_10 = arith.constant 0 : index
    %10 = vector.load %arg2[%c1, %c0_9, %c0_10] : memref<2x4x256xf32, #tpu.memory_space<vmem>>, vector<1x4x256xf32>
    %11 = vector.shape_cast %10 : vector<1x4x256xf32> to vector<4x256xf32>
    %cst_11 = arith.constant dense<0.000000e+00> : vector<8x256xf32>
    %12 = tpu.matmul %0, %11, %cst_11 {dimension_numbers = #tpu.dot_dimension_numbers<[1], [0], [0], [1], [0, 0, 1, 1], [], []>} : vector<8x4xf32>, vector<4x256xf32>, vector<8x256xf32> -> vector<8x256xf32>
    %13 = vector.broadcast %1 : vector<8x1xf32> to vector<8x256xf32>
    %14 = arith.addf %12, %13 : vector<8x256xf32>
    %c1_12 = arith.constant 1 : index
    %c0_13 = arith.constant 0 : index
    %c0_14 = arith.constant 0 : index
    %15 = vector.load %arg5[%c1_12, %c0_13, %c0_14] : memref<2x8x256xf32, #tpu.memory_space<vmem>>, vector<1x8x256xf32>
    %16 = vector.shape_cast %15 : vector<1x8x256xf32> to vector<8x256xf32>
    %17 = vector.shape_cast %14 : vector<8x256xf32> to vector<1x8x256xf32>
    tpu.vector_store %arg5[%c1_12, %c0_13, %c0_14], %17 {strides = array<i32>} : memref<2x8x256xf32, #tpu.memory_space<vmem>>, vector<1x8x256xf32>,
    return
  }
  func.func @transform_0(%arg0: i32, %arg1: i32) -> (i32, i32, i32) {
    %c0_i32 = arith.constant 0 : i32
    %c0_i32_0 = arith.constant 0 : i32
    return %arg0, %c0_i32, %arg1 : i32, i32, i32
  }
  func.func @transform_1(%arg0: i32, %arg1: i32) -> (i32, i32) {
    %c0_i32 = arith.constant 0 : i32
    %c0_i32_0 = arith.constant 0 : i32
    %c0_i32_1 = arith.constant 0 : i32
    return %c0_i32, %c0_i32_0 : i32, i32
  }
  func.func @transform_2(%arg0: i32, %arg1: i32) -> (i32, i32) {
    %c0_i32 = arith.constant 0 : i32
    %c0_i32_0 = arith.constant 0 : i32
    %c0_i32_1 = arith.constant 0 : i32
    return %c0_i32, %c0_i32_0 : i32, i32
  }
  func.func @transform_3(%arg0: i32, %arg1: i32) -> (i32, i32, i32) {
    %c0_i32 = arith.constant 0 : i32
    %c0_i32_0 = arith.constant 0 : i32
    return %arg0, %c0_i32, %arg1 : i32, i32, i32
  }
}

</mosaic_0001>

<bundles_post_ra>
// kernel: conv_bn_forward.3
= control target key start
LH: loop header
LB: loop body
LE: loop exit
PB: predicated region body
PF: predicated region fallthrough
CT: control target
= control target key end

     0   :  { %vm28_vm0 = vcmask 1043456   ;;  %v206_v2 = vmov 0.0   ;;  %v207_v5 = vmov 0   ;;  %vm24_vm1 = vcmask 31744   ;;  %s256_s0 = inlined_call_operand.vmem [shape: f32[2,4,256], index: 0, kind: input, shape index: {}]   ;;  %s257_s1 = inlined_call_operand.vmem [shape: f32[8,4], index: 1, kind: input, shape index: {}]   ;;  %s258_s2 = inlined_call_operand.vmem [shape: f32[8,1], index: 2, kind: input, shape index: {}]   ;;  %s259_s3 = inlined_call_operand.vmem [shape: f32[2,8,256], index: 3, kind: output, shape index: {}]  }
   0x1   :  { %v16_v0 = vld [vmem:[%s256_s0] sm:$0xff]  ;;  %v195_v1 = vld [vmem:[%s256_s0 + $0x8] sm:$0xff]  ;;  %97 = vmatprep.mubr.f32.mxu0 %v206_v2  ;;  %178 = vmatprep.mubr.f32.mxu1 %v206_v2 }
   0x2   :  { %v23_v3 = vcombine.high %v16_v0, %v16_v0  ;;  %v109_v4 = vcombine.high %v195_v1, %v195_v1  ;;  %203 = vset.pattern.permute.xlu0 %v207_v5  ;;  %v15_v6 = vld [vmem:[%s258_s2] sm:$0xff] }
   0x3   :  { %v14_v7 = vld [vmem:[%s257_s1] sm:$0xff]  ;;  %19 = vperm.xlu0 %203, %v15_v6  }
   0x4   :  { %192 = vmatprep.subr.msk.mxu0 %vm28_vm0, %v23_v3  ;;  %196 = vmatprep.subr.msk.mxu1 %vm28_vm0, %v109_v4 }
   0x5   :  { %193 = vmatpush1.msk.msra.mxu0 %vm28_vm0, %v16_v0  ;;  %197 = vmatpush1.msk.msra.mxu1 %vm28_vm0, %v195_v1 }
   0x6   :  { %194 = vmatmul.mubr.msk.f32.vlgmr.msra.gmra.mxu0 %vm24_vm1, %v14_v7  ;;  %198 = vmatmul.mubr.msk.f32.vlgmr.msra.gmra.mxu1 %vm24_vm1, %v14_v7 }
  0x7e   :  { %v20_v8 = vpop.permute.xlu0 %19 }
  0xc6   :  { %v99_v9 = vpop.f32.mrf.mxu0  ;;  %v180_v10 = vpop.f32.mrf.mxu1 }
  0xc7   :  { %v100_v11 = vadd.f32 %v99_v9, %v20_v8  ;;  %v181_v12 = vadd.f32 %v180_v10, %v20_v8 }
  0xc8   :  { %v101_v13 = vpop.f32.mrf.mxu0  ;;  %v182_v14 = vpop.f32.mrf.mxu1 }
  0xc9   :  { %104 = vst [vmem:[%s259_s3] sm:$0xff] %v100_v11  ;;  %199 = vst [vmem:[%s259_s3 + $0x10] sm:$0xff] %v181_v12  ;;  %v102_v15 = vadd.f32 %v101_v13, %v20_v8  ;;  %v183_v16 = vadd.f32 %v182_v14, %v20_v8 }
  0xcb   :  { %105 = vst [vmem:[%s259_s3 + $0x8] sm:$0xff] %v102_v15  ;;  %200 = vst [vmem:[%s259_s3 + $0x18] sm:$0xff] %v183_v16 }

// kernel: conv_bn_forward.2
= control target key start
LH: loop header
LB: loop body
LE: loop exit
PB: predicated region body
PF: predicated region fallthrough
CT: control target
= control target key end

     0   :  { %vm17_vm0 = vcmask 7168   ;;  %vm28_vm1 = vcmask 1043456   ;;  %v230_v1 = vmov 0.0   ;;  %vm24_vm2 = vcmask 31744   ;;  %s296_s0 = inlined_call_operand.vmem [shape: f32[2,4,256], index: 0, kind: input, shape index: {}]   ;;  %s297_s2 = inlined_call_operand.vmem [shape: f32[1,8,1], index: 2, kind: output, shape index: {0}]   ;;  %s298_s3 = inlined_call_operand.vmem [shape: f32[1,8,1], index: 3, kind: output, shape index: {1}]   ;;  %s299_s1 = inlined_call_operand.vmem [shape: f32[8,4], index: 1, kind: input, shape index: {}]  }
   0x1   :  { %v21_v0 = vld [vmem:[%s296_s0] sm:$0xff]  ;;  %18 = vst.msk [vmem:[%s297_s2] sm:$0xff] %vm17_vm0, %v230_v1  ;;  %19 = vst.msk [vmem:[%s298_s3] sm:$0xff] %vm17_vm0, %v230_v1  ;;  %97 = vmatprep.mubr.f32.mxu0 %v230_v1  ;;  %v223_v2 = vld [vmem:[%s296_s0 + $0x8] sm:$0xff]  ;;  %191 = vmatprep.mubr.f32.mxu1 %v230_v1 }
   0x2   :  { %v23_v3 = vcombine.high %v21_v0, %v21_v0  ;;  %v122_v4 = vcombine.high %v223_v2, %v223_v2  ;;  %v20_v5 = vld [vmem:[%s299_s1] sm:$0xff] }
   0x4   :  { %220 = vmatprep.subr.msk.mxu0 %vm28_vm1, %v23_v3  ;;  %224 = vmatprep.subr.msk.mxu1 %vm28_vm1, %v122_v4 }
   0x5   :  { %221 = vmatpush1.msk.msra.mxu0 %vm28_vm1, %v21_v0  ;;  %225 = vmatpush1.msk.msra.mxu1 %vm28_vm1, %v223_v2 }
   0x6   :  { %222 = vmatmul.mubr.msk.f32.vlgmr.msra.gmra.mxu0 %vm24_vm2, %v20_v5  ;;  %226 = vmatmul.mubr.msk.f32.vlgmr.msra.gmra.mxu1 %vm24_vm2, %v20_v5 }
   0x8   :  { %v104_v18 = vld [vmem:[%s297_s2] sm:$0xff] }
   0x9   :  { %v111_v21 = vld [vmem:[%s298_s3] sm:$0xff] }
  0xc6   :  { %v99_v6 = vpop.f32.mrf.mxu0  ;;  %v193_v7 = vpop.f32.mrf.mxu1 }
  0xc7   :  { %v205_v8 = vmul.f32 %v193_v7, %v193_v7  ;;  %v112_v15 = vmul.f32 %v99_v6, %v99_v6 }
  0xc8   :  { %v101_v9 = vpop.f32.mrf.mxu0  ;;  %v195_v10 = vpop.f32.mrf.mxu1 }
  0xc9   :  { %v113_v11 = vmul.f32 %v101_v9, %v101_v9  ;;  %v105_v12 = vadd.f32 %v101_v9, %v99_v6  ;;  %v206_v13 = vmul.f32 %v195_v10, %v195_v10  ;;  %v199_v14 = vadd.f32 %v195_v10, %v193_v7 }
  0xcb   :  { %106 = vadd.xlane.f32.xlu0 %v105_v12  ;;  %200 = vadd.xlane.f32.xlu1 %v199_v14  ;;  %v207_v16 = vadd.f32 %v206_v13, %v205_v8  ;;  %v114_v17 = vadd.f32 %v113_v11, %v112_v15 }
  0xcf   :  { %115 = vadd.xlane.f32.xlu0 %v114_v17  ;;  %208 = vadd.xlane.f32.xlu1 %v207_v16 }
 0x154   :  { %v107_v19 = vpop.xlane.xlu0 %106  ;;  %v201_v24 = vpop.xlane.xlu1 %200 }
 0x155   :  { %v108_v20 = vadd.f32 %v107_v19, %v104_v18 }
 0x157   :  { %110 = vst.msk [vmem:[%s297_s2] sm:$0xff] %vm17_vm0, %v108_v20 }
 0x158   :  { %v116_v22 = vpop.xlane.xlu0 %115  ;;  %v209_v27 = vpop.xlane.xlu1 %208 }
 0x159   :  { %v117_v23 = vadd.f32 %v116_v22, %v111_v21 }
 0x15b   :  { %118 = vst.msk [vmem:[%s298_s3] sm:$0xff] %vm17_vm0, %v117_v23 }
 0x15e   :  { %v198_v25 = vld [vmem:[%s297_s2] sm:$0xff] }
 0x15f   :  { %v202_v26 = vadd.f32 %v201_v24, %v198_v25 }
 0x161   :  { %203 = vst.msk [vmem:[%s297_s2] sm:$0xff] %vm17_vm0, %v202_v26 }
 0x162   :  { %v204_v28 = vld [vmem:[%s298_s3] sm:$0xff] }
 0x163   :  { %v210_v29 = vadd.f32 %v209_v27, %v204_v28 }
 0x165   :  { %211 = vst.msk [vmem:[%s298_s3] sm:$0xff] %vm17_vm0, %v210_v29 }

</bundles_post_ra>
